<compile_context>
chip_gen: v5e
topology: v5e:2x2
jax: 0.10.0
libtpu: 0.0.40
codegen_flags: <defaults>
</compile_context>

<pallas_src>
import functools

import jax
import jax.numpy as jnp
from jax.experimental import pallas as pl
from jax.experimental.pallas import tpu as pltpu


def _simple_kernel(x_ref, y_ref, w12_ref, b12x2_ref, o_ref, *, bx, by):
    """x_ref: (bx, S, D), y_ref: (by, S, D), w12: (D, O), b12x2: (1, O),
    o_ref: (S, O)."""
    w12 = w12_ref[...]

    def group_max(ref, nb):
        # Static, unrolled per-batch dot + running max (tiny B).
        m = jnp.dot(ref[0], w12, preferred_element_type=jnp.float32)
        for b in range(1, nb):
            m = jnp.maximum(
                m, jnp.dot(ref[b], w12, preferred_element_type=jnp.float32))
        return m

    # max_b(x_b @ w12 + b12) + max_b(y_b @ w12 + b12)
    #   == max_b(x_b @ w12) + max_b(y_b @ w12) + 2*b12
    o_ref[...] = group_max(x_ref, bx) + group_max(y_ref, by) + b12x2_ref[...]


def make_fused_params(w1, b1, w2, b2):
    """Call-invariant fused parameters (compute once, reuse every call)."""
    w12 = w1 @ w2                      # (D, O)
    b12x2 = 2.0 * (b1 @ w2 + b2)       # (1, O)
    return w12, b12x2


def simple_forward(x, y, w12, b12x2):
    """x: (Bx, S, D), y: (By, S, D); returns (S, O) float32."""
    bx, s, d = x.shape
    by, s2, d2 = y.shape
    assert (s, d) == (s2, d2)
    odim = w12.shape[1]

    kernel = functools.partial(_simple_kernel, bx=bx, by=by)

    flops = 2 * (bx + by) * s * d * odim
    bytes_accessed = 4 * (x.size + y.size + w12.size + b12x2.size + s * odim)

    return pl.pallas_call(
        kernel,
        grid=(1,),
        in_specs=[
            pl.BlockSpec((bx, s, d), lambda i: (0, 0, 0)),
            pl.BlockSpec((by, s, d), lambda i: (0, 0, 0)),
            pl.BlockSpec((d, odim), lambda i: (0, 0)),
            pl.BlockSpec((1, odim), lambda i: (0, 0)),
        ],
        out_specs=pl.BlockSpec((s, odim), lambda i: (0, 0)),
        out_shape=jax.ShapeDtypeStruct((s, odim), jnp.float32),
        compiler_params=pltpu.CompilerParams(
            dimension_semantics=("arbitrary",),
        ),
        cost_estimate=pl.CostEstimate(
            flops=flops, transcendentals=0, bytes_accessed=bytes_accessed),
    )(x, y, w12, b12x2)


def _reference(x, y, w1, b1, w2, b2):
    def mlp(v):
        return (v @ w1 + b1[0]) @ w2 + b2[0]
    return jnp.max(mlp(x), axis=0) + jnp.max(mlp(y), axis=0)


if __name__ == "__main__":
    key = jax.random.PRNGKey(0)
    D, H, O = 10, 32, 16            # input_dim=10 (from x/y), small hid/out dims
    kx, ky, k1, k2, k3, k4 = jax.random.split(key, 6)

    x = jax.random.normal(kx, (4, 50, D), dtype=jnp.float32)
    y = jax.random.normal(ky, (5, 50, D), dtype=jnp.float32)

    # Deterministic "Linear" params. Stored transposed vs PyTorch: w = W.T
    w1 = jax.random.normal(k1, (D, H), dtype=jnp.float32) * 0.1
    b1 = jax.random.normal(k2, (1, H), dtype=jnp.float32) * 0.1
    w2 = jax.random.normal(k3, (H, O), dtype=jnp.float32) * 0.1
    b2 = jax.random.normal(k4, (1, O), dtype=jnp.float32) * 0.1

    # Fused, call-invariant parameters (done once, outside the per-call path).
    w12, b12x2 = make_fused_params(w1, b1, w2, b2)

    fwd = jax.jit(simple_forward)
    out = jax.block_until_ready(fwd(x, y, w12, b12x2))
    ref = _reference(x, y, w1, b1, w2, b2)

    assert out.shape == (50, O), out.shape
    assert jnp.allclose(out, ref, atol=1e-4, rtol=1e-4), "mismatch vs JAX reference"
    print("KERNEL_OK")
</pallas_src>

<mosaic_0001>
module attributes {stable_mosaic.version = 11 : i64} {
  func.func @_simple_kernel(%arg0: i32, %arg1: memref<4x50x10xf32, #tpu.memory_space<vmem>>, %arg2: memref<5x50x10xf32, #tpu.memory_space<vmem>>, %arg3: memref<10x16xf32, #tpu.memory_space<vmem>>, %arg4: memref<1x16xf32, #tpu.memory_space<vmem>>, %arg5: memref<50x16xf32, #tpu.memory_space<vmem>>) attributes {dimension_semantics = [#tpu.dimension_semantics<arbitrary>], iteration_bounds = array<i64: 1>, scalar_prefetch = 0 : i64, scratch_operands = 0 : i64, tpu.core_type = #tpu.core_type<tc>, window_params = [{pipeline_mode = #tpu.pipeline_mode<synchronous>, transform_indices = @transform_0, window_bounds = array<i64: 4, 50, 10>}, {pipeline_mode = #tpu.pipeline_mode<synchronous>, transform_indices = @transform_1, window_bounds = array<i64: 5, 50, 10>}, {pipeline_mode = #tpu.pipeline_mode<synchronous>, transform_indices = @transform_2, window_bounds = array<i64: 10, 16>}, {pipeline_mode = #tpu.pipeline_mode<synchronous>, transform_indices = @transform_3, window_bounds = array<i64: 1, 16>}, {pipeline_mode = #tpu.pipeline_mode<synchronous>, transform_indices = @transform_4, window_bounds = array<i64: 50, 16>}]} {
    %c0 = arith.constant 0 : index
    %c0_0 = arith.constant 0 : index
    %0 = vector.load %arg3[%c0, %c0_0] : memref<10x16xf32, #tpu.memory_space<vmem>>, vector<10x16xf32>
    %c0_1 = arith.constant 0 : index
    %c0_2 = arith.constant 0 : index
    %c0_3 = arith.constant 0 : index
    %1 = vector.load %arg1[%c0_1, %c0_2, %c0_3] : memref<4x50x10xf32, #tpu.memory_space<vmem>>, vector<1x50x10xf32>
    %2 = vector.shape_cast %1 : vector<1x50x10xf32> to vector<50x10xf32>
    %cst = arith.constant dense<0.000000e+00> : vector<50x16xf32>
    %3 = tpu.matmul %2, %0, %cst {dimension_numbers = #tpu.dot_dimension_numbers<[1], [0], [0], [1], [0, 0, 1, 1], [], []>} : vector<50x10xf32>, vector<10x16xf32>, vector<50x16xf32> -> vector<50x16xf32>
    %c1 = arith.constant 1 : index
    %c0_4 = arith.constant 0 : index
    %c0_5 = arith.constant 0 : index
    %4 = vector.load %arg1[%c1, %c0_4, %c0_5] : memref<4x50x10xf32, #tpu.memory_space<vmem>>, vector<1x50x10xf32>
    %5 = vector.shape_cast %4 : vector<1x50x10xf32> to vector<50x10xf32>
    %cst_6 = arith.constant dense<0.000000e+00> : vector<50x16xf32>
    %6 = tpu.matmul %5, %0, %cst_6 {dimension_numbers = #tpu.dot_dimension_numbers<[1], [0], [0], [1], [0, 0, 1, 1], [], []>} : vector<50x10xf32>, vector<10x16xf32>, vector<50x16xf32> -> vector<50x16xf32>
    %7 = arith.maximumf %3, %6 : vector<50x16xf32>
    %c2 = arith.constant 2 : index
    %c0_7 = arith.constant 0 : index
    %c0_8 = arith.constant 0 : index
    %8 = vector.load %arg1[%c2, %c0_7, %c0_8] : memref<4x50x10xf32, #tpu.memory_space<vmem>>, vector<1x50x10xf32>
    %9 = vector.shape_cast %8 : vector<1x50x10xf32> to vector<50x10xf32>
    %cst_9 = arith.constant dense<0.000000e+00> : vector<50x16xf32>
    %10 = tpu.matmul %9, %0, %cst_9 {dimension_numbers = #tpu.dot_dimension_numbers<[1], [0], [0], [1], [0, 0, 1, 1], [], []>} : vector<50x10xf32>, vector<10x16xf32>, vector<50x16xf32> -> vector<50x16xf32>
    %11 = arith.maximumf %7, %10 : vector<50x16xf32>
    %c3 = arith.constant 3 : index
    %c0_10 = arith.constant 0 : index
    %c0_11 = arith.constant 0 : index
    %12 = vector.load %arg1[%c3, %c0_10, %c0_11] : memref<4x50x10xf32, #tpu.memory_space<vmem>>, vector<1x50x10xf32>
    %13 = vector.shape_cast %12 : vector<1x50x10xf32> to vector<50x10xf32>
    %cst_12 = arith.constant dense<0.000000e+00> : vector<50x16xf32>
    %14 = tpu.matmul %13, %0, %cst_12 {dimension_numbers = #tpu.dot_dimension_numbers<[1], [0], [0], [1], [0, 0, 1, 1], [], []>} : vector<50x10xf32>, vector<10x16xf32>, vector<50x16xf32> -> vector<50x16xf32>
    %15 = arith.maximumf %11, %14 : vector<50x16xf32>
    %c0_13 = arith.constant 0 : index
    %c0_14 = arith.constant 0 : index
    %c0_15 = arith.constant 0 : index
    %16 = vector.load %arg2[%c0_13, %c0_14, %c0_15] : memref<5x50x10xf32, #tpu.memory_space<vmem>>, vector<1x50x10xf32>
    %17 = vector.shape_cast %16 : vector<1x50x10xf32> to vector<50x10xf32>
    %cst_16 = arith.constant dense<0.000000e+00> : vector<50x16xf32>
    %18 = tpu.matmul %17, %0, %cst_16 {dimension_numbers = #tpu.dot_dimension_numbers<[1], [0], [0], [1], [0, 0, 1, 1], [], []>} : vector<50x10xf32>, vector<10x16xf32>, vector<50x16xf32> -> vector<50x16xf32>
    %c1_17 = arith.constant 1 : index
    %c0_18 = arith.constant 0 : index
    %c0_19 = arith.constant 0 : index
    %19 = vector.load %arg2[%c1_17, %c0_18, %c0_19] : memref<5x50x10xf32, #tpu.memory_space<vmem>>, vector<1x50x10xf32>
    %20 = vector.shape_cast %19 : vector<1x50x10xf32> to vector<50x10xf32>
    %cst_20 = arith.constant dense<0.000000e+00> : vector<50x16xf32>
    %21 = tpu.matmul %20, %0, %cst_20 {dimension_numbers = #tpu.dot_dimension_numbers<[1], [0], [0], [1], [0, 0, 1, 1], [], []>} : vector<50x10xf32>, vector<10x16xf32>, vector<50x16xf32> -> vector<50x16xf32>
    %22 = arith.maximumf %18, %21 : vector<50x16xf32>
    %c2_21 = arith.constant 2 : index
    %c0_22 = arith.constant 0 : index
    %c0_23 = arith.constant 0 : index
    %23 = vector.load %arg2[%c2_21, %c0_22, %c0_23] : memref<5x50x10xf32, #tpu.memory_space<vmem>>, vector<1x50x10xf32>
    %24 = vector.shape_cast %23 : vector<1x50x10xf32> to vector<50x10xf32>
    %cst_24 = arith.constant dense<0.000000e+00> : vector<50x16xf32>
    %25 = tpu.matmul %24, %0, %cst_24 {dimension_numbers = #tpu.dot_dimension_numbers<[1], [0], [0], [1], [0, 0, 1, 1], [], []>} : vector<50x10xf32>, vector<10x16xf32>, vector<50x16xf32> -> vector<50x16xf32>
    %26 = arith.maximumf %22, %25 : vector<50x16xf32>
    %c3_25 = arith.constant 3 : index
    %c0_26 = arith.constant 0 : index
    %c0_27 = arith.constant 0 : index
    %27 = vector.load %arg2[%c3_25, %c0_26, %c0_27] : memref<5x50x10xf32, #tpu.memory_space<vmem>>, vector<1x50x10xf32>
    %28 = vector.shape_cast %27 : vector<1x50x10xf32> to vector<50x10xf32>
    %cst_28 = arith.constant dense<0.000000e+00> : vector<50x16xf32>
    %29 = tpu.matmul %28, %0, %cst_28 {dimension_numbers = #tpu.dot_dimension_numbers<[1], [0], [0], [1], [0, 0, 1, 1], [], []>} : vector<50x10xf32>, vector<10x16xf32>, vector<50x16xf32> -> vector<50x16xf32>
    %30 = arith.maximumf %26, %29 : vector<50x16xf32>
    %c4 = arith.constant 4 : index
    %c0_29 = arith.constant 0 : index
    %c0_30 = arith.constant 0 : index
    %31 = vector.load %arg2[%c4, %c0_29, %c0_30] : memref<5x50x10xf32, #tpu.memory_space<vmem>>, vector<1x50x10xf32>
    %32 = vector.shape_cast %31 : vector<1x50x10xf32> to vector<50x10xf32>
    %cst_31 = arith.constant dense<0.000000e+00> : vector<50x16xf32>
    %33 = tpu.matmul %32, %0, %cst_31 {dimension_numbers = #tpu.dot_dimension_numbers<[1], [0], [0], [1], [0, 0, 1, 1], [], []>} : vector<50x10xf32>, vector<10x16xf32>, vector<50x16xf32> -> vector<50x16xf32>
    %34 = arith.maximumf %30, %33 : vector<50x16xf32>
    %35 = arith.addf %15, %34 : vector<50x16xf32>
    %c0_32 = arith.constant 0 : index
    %c0_33 = arith.constant 0 : index
    %36 = vector.load %arg4[%c0_32, %c0_33] : memref<1x16xf32, #tpu.memory_space<vmem>>, vector<1x16xf32>
    %37 = vector.broadcast %36 : vector<1x16xf32> to vector<50x16xf32>
    %38 = arith.addf %35, %37 : vector<50x16xf32>
    %c0_34 = arith.constant 0 : index
    %c0_35 = arith.constant 0 : index
    %39 = vector.load %arg5[%c0_34, %c0_35] : memref<50x16xf32, #tpu.memory_space<vmem>>, vector<50x16xf32>
    tpu.vector_store %arg5[%c0_34, %c0_35], %38 {strides = array<i32>} : memref<50x16xf32, #tpu.memory_space<vmem>>, vector<50x16xf32>,
    return
  }
  func.func @transform_0(%arg0: i32) -> (i32, i32, i32) {
    %c0_i32 = arith.constant 0 : i32
    %c0_i32_0 = arith.constant 0 : i32
    %c0_i32_1 = arith.constant 0 : i32
    %c0_i32_2 = arith.constant 0 : i32
    return %c0_i32, %c0_i32_0, %c0_i32_1 : i32, i32, i32
  }
  func.func @transform_1(%arg0: i32) -> (i32, i32, i32) {
    %c0_i32 = arith.constant 0 : i32
    %c0_i32_0 = arith.constant 0 : i32
    %c0_i32_1 = arith.constant 0 : i32
    %c0_i32_2 = arith.constant 0 : i32
    return %c0_i32, %c0_i32_0, %c0_i32_1 : i32, i32, i32
  }
  func.func @transform_2(%arg0: i32) -> (i32, i32) {
    %c0_i32 = arith.constant 0 : i32
    %c0_i32_0 = arith.constant 0 : i32
    %c0_i32_1 = arith.constant 0 : i32
    return %c0_i32, %c0_i32_0 : i32, i32
  }
  func.func @transform_3(%arg0: i32) -> (i32, i32) {
    %c0_i32 = arith.constant 0 : i32
    %c0_i32_0 = arith.constant 0 : i32
    %c0_i32_1 = arith.constant 0 : i32
    return %c0_i32, %c0_i32_0 : i32, i32
  }
  func.func @transform_4(%arg0: i32) -> (i32, i32) {
    %c0_i32 = arith.constant 0 : i32
    %c0_i32_0 = arith.constant 0 : i32
    %c0_i32_1 = arith.constant 0 : i32
    return %c0_i32, %c0_i32_0 : i32, i32
  }
}

</mosaic_0001>

<bundles_post_ra>
// kernel: simple_forward.1
= control target key start
LH: loop header
LB: loop body
LE: loop exit
PB: predicated region body
PF: predicated region fallthrough
CT: control target
= control target key end

     0   :  { %vm48_vm0 = vcmask 1041408   ;;  %vm26_vm1 = vcmask 80896   ;;  %vm692_vm2 = vcmask 130048   ;;  %vm699_vm3 = vcmask 123904   ;;  %s1233_s2 = inlined_call_operand.vmem [shape: f32[10,16], index: 2, kind: input, shape index: {}]   ;;  %s1234_s0 = inlined_call_operand.vmem [shape: f32[4,50,10], index: 0, kind: input, shape index: {}]   ;;  %s1235_s1 = inlined_call_operand.vmem [shape: f32[5,50,10], index: 1, kind: input, shape index: {}]   ;;  %s1236_s3 = inlined_call_operand.vmem [shape: f32[1,16], index: 3, kind: input, shape index: {}]   ;;  %s1237_s4 = inlined_call_operand.vmem [shape: f32[50,16], index: 4, kind: output, shape index: {}]  }
   0x1   :  { %v18_v0 = vld [vmem:[%s1233_s2 + $0x8] sm:$0x3]  ;;  %v17_v1 = vld [vmem:[%s1233_s2] sm:$0xff]  ;;  %v21_v2 = vld [vmem:[%s1234_s0 + $0x10] sm:$0xff] }
   0x2   :  { %826 = vmatpush.msk.msra.mxu1 %vm48_vm0, %v18_v0  ;;  %828 = vmatpush.msk.msra.mxu3 %vm48_vm0, %v18_v0  ;;  %v24_v3 = vld [vmem:[%s1234_s0 + $0x28] sm:$0xff]  ;;  %v23_v4 = vld [vmem:[%s1234_s0 + $0x20] sm:$0xff]  ;;  %v22_v6 = vld [vmem:[%s1234_s0 + $0x18] sm:$0xff] }
   0x3   :  { %827 = vmatpush.msk.msra.mxu2 %vm48_vm0, %v18_v0  ;;  %705 = vmatpush.msk.msra.mxu0 %vm48_vm0, %v18_v0  ;;  %v19_v5 = vld [vmem:[%s1234_s0] sm:$0xff]  ;;  %v25_v7 = vld [vmem:[%s1234_s0 + $0x30] sm:$0x3]  ;;  %v20_v9 = vld [vmem:[%s1234_s0 + $0x8] sm:$0xff] }
   0x4   :  { %829 = vmatpush.msra.mxu1 %v17_v1  ;;  %831 = vmatpush.msra.mxu3 %v17_v1  ;;  %v728_v8 = vld [vmem:[%s1234_s0 + $0x70] sm:$0xff]  ;;  %v713_v10 = vld [vmem:[%s1234_s0 + $0x38] sm:$0xff]  ;;  %v743_v11 = vld [vmem:[%s1234_s0 + $0xa8] sm:$0xff] }
   0x5   :  { %708 = vmatmul.msk.f32.vlgmr.msra.gmra.mxu1 %vm26_vm1, %v21_v2  ;;  %711 = vmatmul.msk.f32.vlgmr.msra.gmra.mxu3 %vm26_vm1, %v24_v3  ;;  %v729_v12 = vld [vmem:[%s1234_s0 + $0x78] sm:$0xff]  ;;  %v312_v13 = vld [vmem:[%s1235_s1] sm:$0xff]  ;;  %v744_v15 = vld [vmem:[%s1234_s0 + $0xb0] sm:$0xff] }
   0x6   :  { %750 = vmatpush.msk.msrb.mxu3 %vm48_vm0, %v18_v0  ;;  %720 = vmatpush.msk.msrb.mxu1 %vm48_vm0, %v18_v0  ;;  %v714_v14 = vld [vmem:[%s1234_s0 + $0x40] sm:$0xff]  ;;  %v313_v17 = vld [vmem:[%s1235_s1 + $0x8] sm:$0xff]  ;;  %v745_v19 = vld [vmem:[%s1234_s0 + $0xb8] sm:$0xff] }
   0x7   :  { %830 = vmatpush.msra.mxu2 %v17_v1  ;;  %67 = vmatpush.msra.mxu0 %v17_v1  ;;  %v730_v16 = vld [vmem:[%s1234_s0 + $0x80] sm:$0xff]  ;;  %v715_v18 = vld [vmem:[%s1234_s0 + $0x48] sm:$0xff]  ;;  %v314_v21 = vld [vmem:[%s1235_s1 + $0x10] sm:$0xff] }
   0x8   :  { %710 = vmatmul.msk.f32.vlgmr.msra.gmra.mxu2 %vm26_vm1, %v23_v4  ;;  %706 = vmatmul.msk.f32.vlgmr.msra.gmra.mxu0 %vm26_vm1, %v19_v5  ;;  %v731_v20 = vld [vmem:[%s1234_s0 + $0x88] sm:$0xff]  ;;  %v716_v22 = vld [vmem:[%s1234_s0 + $0x50] sm:$0xff]  ;;  %v746_v23 = vld [vmem:[%s1234_s0 + $0xc0] sm:$0xff] }
   0x9   :  { %735 = vmatpush.msk.msrb.mxu2 %vm48_vm0, %v18_v0  ;;  %282 = vmatpush.msrb.mxu3 %v17_v1  ;;  %v732_v24 = vld [vmem:[%s1234_s0 + $0x90] sm:$0xff]  ;;  %v315_v25 = vld [vmem:[%s1235_s1 + $0x18] sm:$0xff]  ;;  %v747_v27 = vld [vmem:[%s1234_s0 + $0xc8] sm:$0xff] }
   0xa   :  { %758 = vmatpush.msk.msrb.mxu0 %vm48_vm0, %v18_v0  ;;  %134 = vmatpush.msrb.mxu1 %v17_v1  ;;  %v717_v26 = vld [vmem:[%s1234_s0 + $0x58] sm:$0xff]  ;;  %v316_v29 = vld [vmem:[%s1235_s1 + $0x20] sm:$0xff]  ;;  %v748_v31 = vld [vmem:[%s1234_s0 + $0xd0] sm:$0xff] }
   0xb   :  { %208 = vmatpush.msrb.mxu2 %v17_v1  ;;  %803 = vmatpush.msk.msra.mxu3 %vm48_vm0, %v18_v0  ;;  %v733_v28 = vld [vmem:[%s1234_s0 + $0x98] sm:$0xff]  ;;  %v718_v30 = vld [vmem:[%s1234_s0 + $0x60] sm:$0xff]  ;;  %v317_v33 = vld [vmem:[%s1235_s1 + $0x28] sm:$0xff] }
   0xc   :  { %355 = vmatpush.msrb.mxu0 %v17_v1  ;;  %773 = vmatpush.msk.msra.mxu1 %vm48_vm0, %v18_v0  ;;  %v734_v32 = vld [vmem:[%s1234_s0 + $0xa0] sm:$0x3]  ;;  %v719_v34 = vld [vmem:[%s1234_s0 + $0x68] sm:$0x3]  ;;  %v749_v35 = vld [vmem:[%s1234_s0 + $0xd8] sm:$0x3] }
   0xd   :  { %788 = vmatpush.msk.msra.mxu2 %vm48_vm0, %v18_v0  ;;  %709 = vmatmul.msk.f32.gmra.mxu1 %vm26_vm1, %v22_v6  ;;  %v781_v36 = vld [vmem:[%s1235_s1 + $0x70] sm:$0xff]  ;;  %v766_v38 = vld [vmem:[%s1235_s1 + $0x38] sm:$0xff]  ;;  %v796_v39 = vld [vmem:[%s1235_s1 + $0xa8] sm:$0xff] }
   0xe   :  { %712 = vmatmul.msk.f32.gmra.mxu3 %vm26_vm1, %v25_v7  ;;  %818 = vmatpush.msk.msra.mxu0 %vm48_vm0, %v18_v0  ;;  %v318_v37 = vld [vmem:[%s1235_s1 + $0x30] sm:$0x3]  ;;  %v782_v40 = vld [vmem:[%s1235_s1 + $0x78] sm:$0xff]  ;;  %v811_v41 = vld [vmem:[%s1235_s1 + $0xe0] sm:$0xff] }
   0xf   :  { %496 = vmatpush.msra.mxu2 %v17_v1  ;;  %570 = vmatpush.msra.mxu3 %v17_v1  ;;  %v767_v42 = vld [vmem:[%s1235_s1 + $0x40] sm:$0xff]  ;;  %v797_v43 = vld [vmem:[%s1235_s1 + $0xb0] sm:$0xff]  ;;  %v812_v45 = vld [vmem:[%s1235_s1 + $0xe8] sm:$0xff] }
  0x10   :  { %736 = vmatmul.msk.f32.vlgmr.msrb.gmra.mxu2 %vm26_vm1, %v728_v8  ;;  %707 = vmatmul.msk.f32.gmra.mxu0 %vm26_vm1, %v20_v9  ;;  %v783_v44 = vld [vmem:[%s1235_s1 + $0x80] sm:$0xff]  ;;  %v768_v46 = vld [vmem:[%s1235_s1 + $0x48] sm:$0xff]  ;;  %v798_v47 = vld [vmem:[%s1235_s1 + $0xb8] sm:$0xff] }
  0x11   :  { %422 = vmatpush.msra.mxu1 %v17_v1  ;;  %644 = vmatpush.msra.mxu0 %v17_v1  ;;  %v784_v48 = vld [vmem:[%s1235_s1 + $0x88] sm:$0xff]  ;;  %v813_v49 = vld [vmem:[%s1235_s1 + $0xf0] sm:$0xff]  ;;  %v799_v51 = vld [vmem:[%s1235_s1 + $0xc0] sm:$0xff] }
  0x12   :  { %v769_v50 = vld [vmem:[%s1235_s1 + $0x50] sm:$0xff]  ;;  %v814_v53 = vld [vmem:[%s1235_s1 + $0xf8] sm:$0xff]  ;;  %v800_v55 = vld [vmem:[%s1235_s1 + $0xc8] sm:$0xff] }
  0x13   :  { %v785_v52 = vld [vmem:[%s1235_s1 + $0x90] sm:$0xff]  ;;  %v770_v54 = vld [vmem:[%s1235_s1 + $0x58] sm:$0xff]  ;;  %v815_v57 = vld [vmem:[%s1235_s1 + $0x100] sm:$0xff] }
  0x14   :  { %v786_v56 = vld [vmem:[%s1235_s1 + $0x98] sm:$0xff]  ;;  %v771_v58 = vld [vmem:[%s1235_s1 + $0x60] sm:$0xff]  ;;  %v801_v59 = vld [vmem:[%s1235_s1 + $0xd0] sm:$0xff] }
  0x15   :  { %721 = vmatmul.msk.f32.vlgmr.msrb.gmra.mxu1 %vm26_vm1, %v713_v10  ;;  %v787_v60 = vld [vmem:[%s1235_s1 + $0xa0] sm:$0x3]  ;;  %v816_v61 = vld [vmem:[%s1235_s1 + $0x108] sm:$0xff]  ;;  %v802_v63 = vld [vmem:[%s1235_s1 + $0xd8] sm:$0x3] }
  0x16   :  { %751 = vmatmul.msk.f32.vlgmr.msrb.gmra.mxu3 %vm26_vm1, %v743_v11  ;;  %v772_v62 = vld [vmem:[%s1235_s1 + $0x68] sm:$0x3]  ;;  %v817_v0 = vld [vmem:[%s1235_s1 + $0x110] sm:$0x3] }
  0x18   :  { %737 = vmatmul.msk.f32.gmra.mxu2 %vm26_vm1, %v729_v12  ;;  %759 = vmatmul.msk.f32.vlgmr.msrb.gmra.mxu0 %vm26_vm1, %v312_v13 }
  0x1d   :  { %722 = vmatmul.msk.f32.gmra.mxu1 %vm26_vm1, %v714_v14 }
  0x1e   :  { %752 = vmatmul.msk.f32.gmra.mxu3 %vm26_vm1, %v744_v15 }
  0x20   :  { %738 = vmatmul.msk.f32.gmra.mxu2 %vm26_vm1, %v730_v16  ;;  %760 = vmatmul.msk.f32.gmra.mxu0 %vm26_vm1, %v313_v17 }
  0x25   :  { %723 = vmatmul.msk.f32.gmra.mxu1 %vm26_vm1, %v715_v18 }
  0x26   :  { %753 = vmatmul.msk.f32.gmra.mxu3 %vm26_vm1, %v745_v19 }
  0x28   :  { %739 = vmatmul.msk.f32.gmra.mxu2 %vm26_vm1, %v731_v20  ;;  %761 = vmatmul.msk.f32.gmra.mxu0 %vm26_vm1, %v314_v21 }
  0x2d   :  { %724 = vmatmul.msk.f32.gmra.mxu1 %vm26_vm1, %v716_v22 }
  0x2e   :  { %754 = vmatmul.msk.f32.gmra.mxu3 %vm26_vm1, %v746_v23 }
  0x30   :  { %740 = vmatmul.msk.f32.gmra.mxu2 %vm26_vm1, %v732_v24  ;;  %762 = vmatmul.msk.f32.gmra.mxu0 %vm26_vm1, %v315_v25 }
  0x35   :  { %725 = vmatmul.msk.f32.gmra.mxu1 %vm26_vm1, %v717_v26 }
  0x36   :  { %755 = vmatmul.msk.f32.gmra.mxu3 %vm26_vm1, %v747_v27 }
  0x38   :  { %741 = vmatmul.msk.f32.gmra.mxu2 %vm26_vm1, %v733_v28  ;;  %763 = vmatmul.msk.f32.gmra.mxu0 %vm26_vm1, %v316_v29 }
  0x3d   :  { %726 = vmatmul.msk.f32.gmra.mxu1 %vm26_vm1, %v718_v30 }
  0x3e   :  { %756 = vmatmul.msk.f32.gmra.mxu3 %vm26_vm1, %v748_v31 }
  0x40   :  { %742 = vmatmul.msk.f32.gmra.mxu2 %vm26_vm1, %v734_v32  ;;  %764 = vmatmul.msk.f32.gmra.mxu0 %vm26_vm1, %v317_v33 }
  0x45   :  { %727 = vmatmul.msk.f32.gmra.mxu1 %vm26_vm1, %v719_v34 }
  0x46   :  { %757 = vmatmul.msk.f32.gmra.mxu3 %vm26_vm1, %v749_v35 }
  0x48   :  { %789 = vmatmul.msk.f32.vlgmr.msra.gmra.mxu2 %vm26_vm1, %v781_v36  ;;  %765 = vmatmul.msk.f32.gmra.mxu0 %vm26_vm1, %v318_v37 }
  0x4d   :  { %774 = vmatmul.msk.f32.vlgmr.msra.gmra.mxu1 %vm26_vm1, %v766_v38 }
  0x4e   :  { %804 = vmatmul.msk.f32.vlgmr.msra.gmra.mxu3 %vm26_vm1, %v796_v39 }
  0x50   :  { %790 = vmatmul.msk.f32.gmra.mxu2 %vm26_vm1, %v782_v40  ;;  %819 = vmatmul.msk.f32.vlgmr.msra.gmra.mxu0 %vm26_vm1, %v811_v41 }
  0x55   :  { %775 = vmatmul.msk.f32.gmra.mxu1 %vm26_vm1, %v767_v42 }
  0x56   :  { %805 = vmatmul.msk.f32.gmra.mxu3 %vm26_vm1, %v797_v43 }
  0x58   :  { %791 = vmatmul.msk.f32.gmra.mxu2 %vm26_vm1, %v783_v44  ;;  %820 = vmatmul.msk.f32.gmra.mxu0 %vm26_vm1, %v812_v45 }
  0x5d   :  { %776 = vmatmul.msk.f32.gmra.mxu1 %vm26_vm1, %v768_v46 }
  0x5e   :  { %806 = vmatmul.msk.f32.gmra.mxu3 %vm26_vm1, %v798_v47 }
  0x60   :  { %792 = vmatmul.msk.f32.gmra.mxu2 %vm26_vm1, %v784_v48  ;;  %821 = vmatmul.msk.f32.gmra.mxu0 %vm26_vm1, %v813_v49  ;;  %v1175_v49 = vld [vmem:[%s1236_s3] ss:$0 sm:$0xff] }
  0x65   :  { %777 = vmatmul.msk.f32.gmra.mxu1 %vm26_vm1, %v769_v50 }
  0x66   :  { %807 = vmatmul.msk.f32.gmra.mxu3 %vm26_vm1, %v799_v51 }
  0x68   :  { %793 = vmatmul.msk.f32.gmra.mxu2 %vm26_vm1, %v785_v52  ;;  %822 = vmatmul.msk.f32.gmra.mxu0 %vm26_vm1, %v814_v53 }
  0x6d   :  { %778 = vmatmul.msk.f32.gmra.mxu1 %vm26_vm1, %v770_v54 }
  0x6e   :  { %808 = vmatmul.msk.f32.gmra.mxu3 %vm26_vm1, %v800_v55 }
  0x70   :  { %794 = vmatmul.msk.f32.gmra.mxu2 %vm26_vm1, %v786_v56  ;;  %823 = vmatmul.msk.f32.gmra.mxu0 %vm26_vm1, %v815_v57 }
  0x75   :  { %779 = vmatmul.msk.f32.gmra.mxu1 %vm26_vm1, %v771_v58 }
  0x76   :  { %809 = vmatmul.msk.f32.gmra.mxu3 %vm26_vm1, %v801_v59 }
  0x78   :  { %795 = vmatmul.msk.f32.gmra.mxu2 %vm26_vm1, %v787_v60  ;;  %824 = vmatmul.msk.f32.gmra.mxu0 %vm26_vm1, %v816_v61 }
  0x7d   :  { %780 = vmatmul.msk.f32.gmra.mxu1 %vm26_vm1, %v772_v62 }
  0x7e   :  { %810 = vmatmul.msk.f32.gmra.mxu3 %vm26_vm1, %v802_v63 }
  0x80   :  { %825 = vmatmul.msk.f32.gmra.mxu0 %vm26_vm1, %v817_v0 }
  0x82   :  { %v1128_v1 = vpop.f32.mrf.mxu1 }
  0x85   :  { %v69_v2 = vpop.f32.mrf.mxu0 }
  0x88   :  { %v1130_v3 = vpop.f32.mrf.mxu3 }
  0x8a   :  { %v1132_v4 = vpop.f32.mrf.mxu1 }
  0x8b   :  { %v1134_v5 = vpop.f32.mrf.mxu2 }
  0x8d   :  { %v72_v6 = vpop.f32.mrf.mxu0 }
  0x91   :  { %v1136_v7 = vpop.f32.mrf.mxu3 }
  0x92   :  { %v136_v8 = vpop.f32.mrf.mxu1 }
  0x93   :  { %v210_v9 = vpop.f32.mrf.mxu2  ;;  %v157_v39 = vmax.f32 %v69_v2, %v136_v8 }
  0x95   :  { %v357_v10 = vpop.f32.mrf.mxu0  ;;  %v231_v43 = vmax.f32 %v157_v39, %v210_v9 }
  0x99   :  { %v284_v11 = vpop.f32.mrf.mxu3 }
  0x9a   :  { %v139_v12 = vpop.f32.mrf.mxu1  ;;  %v305_v46 = vmax.f32 %v231_v43, %v284_v11 }
  0x9b   :  { %v213_v13 = vpop.f32.mrf.mxu2  ;;  %v158_v51 = vmax.f32 %v72_v6, %v139_v12 }
  0x9d   :  { %v360_v14 = vpop.f32.mrf.mxu0  ;;  %v232_v57 = vmax.f32 %v158_v51, %v213_v13 }
  0xa1   :  { %v287_v15 = vpop.f32.mrf.mxu3 }
  0xa2   :  { %v142_v16 = vpop.f32.mrf.mxu1  ;;  %v306_v60 = vmax.f32 %v232_v57, %v287_v15 }
  0xa3   :  { %v216_v17 = vpop.f32.mrf.mxu2  ;;  %v159_v0 = vmax.f32 %v1128_v1, %v142_v16 }
  0xa5   :  { %v363_v18 = vpop.f32.mrf.mxu0  ;;  %v233_v11 = vmax.f32 %v159_v0, %v216_v17 }
  0xa9   :  { %v1138_v19 = vpop.f32.mrf.mxu3 }
  0xaa   :  { %v1140_v20 = vpop.f32.mrf.mxu1 }
  0xab   :  { %v1142_v21 = vpop.f32.mrf.mxu2  ;;  %v160_v16 = vmax.f32 %v1132_v4, %v1140_v20 }
  0xad   :  { %v1144_v22 = vpop.f32.mrf.mxu0 }
  0xb1   :  { %v1146_v23 = vpop.f32.mrf.mxu3 }
  0xb2   :  { %v1148_v24 = vpop.f32.mrf.mxu1 }
  0xb3   :  { %v1150_v25 = vpop.f32.mrf.mxu2  ;;  %v161_v43 = vmax.f32 %v1134_v5, %v1148_v24 }
  0xb5   :  { %v1152_v26 = vpop.f32.mrf.mxu0 }
  0xb9   :  { %v1154_v27 = vpop.f32.mrf.mxu3 }
  0xba   :  { %v1156_v28 = vpop.f32.mrf.mxu1 }
  0xbb   :  { %v1158_v29 = vpop.f32.mrf.mxu2 }
  0xbd   :  { %v1160_v30 = vpop.f32.mrf.mxu0 }
  0xc1   :  { %v1162_v31 = vpop.f32.mrf.mxu3 }
  0xc2   :  { %v1164_v32 = vpop.f32.mrf.mxu1 }
  0xc3   :  { %v1166_v33 = vpop.f32.mrf.mxu2 }
  0xc5   :  { %v1168_v34 = vpop.f32.mrf.mxu0 }
  0xc9   :  { %v1170_v35 = vpop.f32.mrf.mxu3 }
  0xca   :  { %v424_v36 = vpop.f32.mrf.mxu1 }
  0xcb   :  { %v445_v37 = vmax.f32 %v357_v10, %v424_v36  ;;  %v498_v38 = vpop.f32.mrf.mxu2 }
  0xcd   :  { %v646_v40 = vpop.f32.mrf.mxu0  ;;  %v519_v41 = vmax.f32 %v445_v37, %v498_v38 }
  0xd1   :  { %v572_v42 = vpop.f32.mrf.mxu3 }
  0xd2   :  { %v593_v44 = vmax.f32 %v519_v41, %v572_v42  ;;  %v427_v45 = vpop.f32.mrf.mxu1 }
  0xd3   :  { %v446_v47 = vmax.f32 %v360_v14, %v427_v45  ;;  %v501_v50 = vpop.f32.mrf.mxu2  ;;  %v307_v14 = vmax.f32 %v233_v11, %v1138_v19 }
  0xd4   :  { %v667_v48 = vmax.f32 %v593_v44, %v646_v40  ;;  %v234_v40 = vmax.f32 %v160_v16, %v1142_v21 }
  0xd5   :  { %v649_v53 = vpop.f32.mrf.mxu0  ;;  %v520_v55 = vmax.f32 %v446_v47, %v501_v50 }
  0xd6   :  { %v674_v52 = vadd.f32 %v667_v48, %v305_v46  ;;  %v308_v41 = vmax.f32 %v234_v40, %v1146_v23  ;;  %v235_v48 = vmax.f32 %v161_v43, %v1150_v25 }
  0xd8   :  { %v685_v54 = vadd.f32 %v1175_v49, %v674_v52  ;;  %v309_v50 = vmax.f32 %v235_v48, %v1154_v27  ;;  %v162_v52 = vmax.f32 %v1130_v3, %v1156_v28 }
  0xd9   :  { %v575_v56 = vpop.f32.mrf.mxu3 }
  0xda   :  { %693 = vst.msk [vmem:[%s1237_s4] sm:$0xff] %vm692_vm2, %v685_v54  ;;  %v594_v58 = vmax.f32 %v520_v55, %v575_v56  ;;  %v430_v59 = vpop.f32.mrf.mxu1  ;;  %v236_v57 = vmax.f32 %v162_v52, %v1158_v29 }
  0xdb   :  { %v447_v61 = vmax.f32 %v363_v18, %v430_v59  ;;  %v504_v63 = vpop.f32.mrf.mxu2 }
  0xdc   :  { %v668_v62 = vmax.f32 %v594_v58, %v649_v53  ;;  %v310_v58 = vmax.f32 %v236_v57, %v1162_v31 }
  0xdd   :  { %v652_v6 = vpop.f32.mrf.mxu0  ;;  %v521_v9 = vmax.f32 %v447_v61, %v504_v63 }
  0xde   :  { %v675_v2 = vadd.f32 %v668_v62, %v306_v60  ;;  %v163_v60 = vmax.f32 %v1136_v7, %v1164_v32 }
  0xe0   :  { %v686_v8 = vadd.f32 %v1175_v49, %v675_v2  ;;  %v237_v2 = vmax.f32 %v163_v60, %v1166_v33 }
  0xe1   :  { %v578_v10 = vpop.f32.mrf.mxu3 }
  0xe2   :  { %694 = vst.msk [vmem:[%s1237_s4 + $0x8] sm:$0xff] %vm692_vm2, %v686_v8  ;;  %v595_v12 = vmax.f32 %v521_v9, %v578_v10  ;;  %v433_v13 = vpop.f32.mrf.mxu1 }
  0xe3   :  { %v448_v15 = vmax.f32 %v1144_v22, %v433_v13  ;;  %v507_v1 = vpop.f32.mrf.mxu2 }
  0xe4   :  { %v669_v18 = vmax.f32 %v595_v12, %v652_v6 }
  0xe5   :  { %v655_v37 = vpop.f32.mrf.mxu0  ;;  %v522_v38 = vmax.f32 %v448_v15, %v507_v1 }
  0xe6   :  { %v676_v36 = vadd.f32 %v669_v18, %v307_v14 }
  0xe8   :  { %v687_v17 = vadd.f32 %v1175_v49, %v676_v36 }
  0xe9   :  { %v581_v39 = vpop.f32.mrf.mxu3 }
  0xea   :  { %695 = vst.msk [vmem:[%s1237_s4 + $0x10] sm:$0xff] %vm692_vm2, %v687_v17  ;;  %v596_v19 = vmax.f32 %v522_v38, %v581_v39  ;;  %v436_v22 = vpop.f32.mrf.mxu1 }
  0xeb   :  { %v449_v42 = vmax.f32 %v1152_v26, %v436_v22  ;;  %v510_v20 = vpop.f32.mrf.mxu2 }
  0xec   :  { %v670_v4 = vmax.f32 %v596_v19, %v655_v37 }
  0xed   :  { %v658_v45 = vpop.f32.mrf.mxu0  ;;  %v523_v46 = vmax.f32 %v449_v42, %v510_v20 }
  0xee   :  { %v677_v44 = vadd.f32 %v670_v4, %v308_v41 }
  0xf0   :  { %v688_v21 = vadd.f32 %v1175_v49, %v677_v44 }
  0xf1   :  { %v584_v47 = vpop.f32.mrf.mxu3 }
  0xf2   :  { %696 = vst.msk [vmem:[%s1237_s4 + $0x18] sm:$0xff] %vm692_vm2, %v688_v21  ;;  %v597_v23 = vmax.f32 %v523_v46, %v584_v47  ;;  %v439_v26 = vpop.f32.mrf.mxu1 }
  0xf3   :  { %v450_v51 = vmax.f32 %v1160_v30, %v439_v26  ;;  %v513_v24 = vpop.f32.mrf.mxu2 }
  0xf4   :  { %v671_v5 = vmax.f32 %v597_v23, %v658_v45 }
  0xf5   :  { %v661_v54 = vpop.f32.mrf.mxu0  ;;  %v524_v55 = vmax.f32 %v450_v51, %v513_v24 }
  0xf6   :  { %v678_v53 = vadd.f32 %v671_v5, %v309_v50 }
  0xf8   :  { %v689_v25 = vadd.f32 %v1175_v49, %v678_v53 }
  0xf9   :  { %v587_v56 = vpop.f32.mrf.mxu3 }
  0xfa   :  { %697 = vst.msk [vmem:[%s1237_s4 + $0x20] sm:$0xff] %vm692_vm2, %v689_v25  ;;  %v598_v27 = vmax.f32 %v524_v55, %v587_v56  ;;  %v442_v30 = vpop.f32.mrf.mxu1 }
  0xfb   :  { %v451_v59 = vmax.f32 %v1168_v34, %v442_v30  ;;  %v516_v28 = vpop.f32.mrf.mxu2  ;;  %v311_v34 = vmax.f32 %v237_v2, %v1170_v35 }
  0xfc   :  { %v672_v3 = vmax.f32 %v598_v27, %v661_v54 }
  0xfd   :  { %v525_v29 = vmax.f32 %v451_v59, %v516_v28  ;;  %v664_v0 = vpop.f32.mrf.mxu0 }
  0xfe   :  { %v679_v61 = vadd.f32 %v672_v3, %v310_v58 }
 0x100   :  { %v690_v62 = vadd.f32 %v1175_v49, %v679_v61 }
 0x101   :  { %v590_v63 = vpop.f32.mrf.mxu3 }
 0x102   :  { %698 = vst.msk [vmem:[%s1237_s4 + $0x28] sm:$0xff] %vm692_vm2, %v690_v62  ;;  %v599_v31 = vmax.f32 %v525_v29, %v590_v63 }
 0x104   :  { %v673_v6 = vmax.f32 %v599_v31, %v664_v0 }
 0x106   :  { %v680_v8 = vadd.f32 %v673_v6, %v311_v34 }
 0x108   :  { %v691_v7 = vadd.f32 %v1175_v49, %v680_v8 }
 0x10a   :  { %700 = vst.msk [vmem:[%s1237_s4 + $0x30] sm:$0x3] %vm699_vm3, %v691_v7 }

</bundles_post_ra>
